<compile_context>
chip_gen: v7x
topology: tpu7x:2x2x1
jax: 0.10.0
libtpu: 0.0.40
codegen_flags: <defaults>
</compile_context>

<pallas_src>
import functools

import jax
import jax.numpy as jnp
from jax.experimental import pallas as pl
from jax.experimental.pallas import tpu as pltpu


def _round_up(x, m):
    return (x + m - 1) // m * m


def _pool_kernel(scene_ref, out_ref, *, inv_len):
    # scene_ref: (TS, L, C) tile of scenes; out_ref: (TS, C)
    x = scene_ref[...].astype(jnp.float32)          # f32 accumulation
    pooled = jnp.sum(x, axis=1) * inv_len           # sum * (1/L), no divide
    out_ref[...] = pooled.astype(out_ref.dtype)


def _gather_kernel(idx_ref, pool_ref, out_ref, *, agents_per_step):
    # idx_ref:  (A_pad,) int32 in SMEM (scalar prefetch)
    # pool_ref: (S_pad, C) pooled scenes, resident in VMEM (constant block idx)
    # out_ref:  (TA, C) output rows for this tile of agents
    base = pl.program_id(0) * agents_per_step
    for j in range(agents_per_step):                # static unroll (TA = 8)
        i = idx_ref[base + j]
        out_ref[pl.ds(j, 1), :] = pool_ref[pl.ds(i, 1), :].astype(out_ref.dtype)


def average_pooling(global_scene, scene_idx, *, scenes_per_step=8,
                    agents_per_step=8):
    """global_scene: (S, L, C); scene_idx: (A,) int -> (A, C)."""
    S, L, C = global_scene.shape
    A = scene_idx.shape[0]
    out_dtype = global_scene.dtype

    # Guard against out-of-range indices (would otherwise read garbage rows).
    scene_idx = jnp.clip(scene_idx.astype(jnp.int32), 0, S - 1)

    # Pad S and A up to multiples of 8 so every block is sublane-dense.
    s_pad = _round_up(S, scenes_per_step)
    a_pad = _round_up(A, agents_per_step)
    if s_pad != S:
        global_scene = jnp.pad(global_scene,
                               ((0, s_pad - S), (0, 0), (0, 0)))
    if a_pad != A:
        scene_idx = jnp.pad(scene_idx, (0, a_pad - A))  # pads gather row 0

    # ---- Phase 1: pool each scene exactly once -> (S_pad, C) in f32 ----
    pool_fn = pl.pallas_call(
        functools.partial(_pool_kernel, inv_len=1.0 / L),
        out_shape=jax.ShapeDtypeStruct((s_pad, C), jnp.float32),
        grid_spec=pltpu.PrefetchScalarGridSpec(
            num_scalar_prefetch=0,
            grid=(s_pad // scenes_per_step,),
            in_specs=[
                pl.BlockSpec((scenes_per_step, L, C), lambda s: (s, 0, 0)),
            ],
            out_specs=pl.BlockSpec((scenes_per_step, C), lambda s: (s, 0)),
        ),
        compiler_params=pltpu.CompilerParams(
            dimension_semantics=("parallel",)),
    )
    scenes_pool = pool_fn(global_scene)

    # ---- Phase 2: gather pooled rows per agent, 8 agents per grid step ----
    gather_fn = pl.pallas_call(
        functools.partial(_gather_kernel, agents_per_step=agents_per_step),
        out_shape=jax.ShapeDtypeStruct((a_pad, C), out_dtype),
        grid_spec=pltpu.PrefetchScalarGridSpec(
            num_scalar_prefetch=1,
            grid=(a_pad // agents_per_step,),
            in_specs=[
                # whole pooled array, constant block index -> stays in VMEM
                pl.BlockSpec((s_pad, C), lambda a, idx: (0, 0)),
            ],
            out_specs=pl.BlockSpec((agents_per_step, C),
                                   lambda a, idx: (a, 0)),
        ),
        compiler_params=pltpu.CompilerParams(
            dimension_semantics=("parallel",)),
    )
    out = gather_fn(scene_idx, scenes_pool)
    return out[:A]


if __name__ == "__main__":
    key = jax.random.PRNGKey(0)
    k1, k2 = jax.random.split(key)

    S, L, C = 3, 16, 128    # scenes, pooled spatial length, channels
    A = 6                   # number of agents

    global_scene = jax.random.normal(k1, (S, L, C), dtype=jnp.float32)
    scene_idx = jax.random.randint(k2, (A,), 0, S, dtype=jnp.int32)

    out = average_pooling(global_scene, scene_idx)
    out = jax.block_until_ready(out)

    # Pure-JAX reference for correctness.
    ref = jnp.mean(global_scene, axis=1)[scene_idx]
    assert out.shape == (A, C)
    assert jnp.allclose(out, ref, atol=1e-5, rtol=1e-5)

    print("KERNEL_OK")
</pallas_src>

<mosaic_0001>
module attributes {stable_mosaic.version = 11 : i64} {
  func.func @_pool_kernel(%arg0: i32, %arg1: memref<8x16x128xf32, #tpu.memory_space<vmem>>, %arg2: memref<8x128xf32, #tpu.memory_space<vmem>>) attributes {dimension_semantics = [#tpu.dimension_semantics<parallel>], iteration_bounds = array<i64: 1>, scalar_prefetch = 0 : i64, scratch_operands = 0 : i64, tpu.core_type = #tpu.core_type<tc>, window_params = [{transform_indices = @transform_0, window_bounds = array<i64: 8, 16, 128>}, {transform_indices = @transform_1, window_bounds = array<i64: 8, 128>}]} {
    %c0 = arith.constant 0 : index
    %c0_0 = arith.constant 0 : index
    %c0_1 = arith.constant 0 : index
    %0 = vector.load %arg1[%c0, %c0_0, %c0_1] : memref<8x16x128xf32, #tpu.memory_space<vmem>>, vector<8x16x128xf32>
    %cst = arith.constant dense<0.000000e+00> : vector<8x128xf32>
    %1 = vector.multi_reduction <add>, %0, %cst [1] : vector<8x16x128xf32> to vector<8x128xf32>
    %cst_2 = arith.constant 6.250000e-02 : f32
    %2 = vector.broadcast %cst_2 : f32 to vector<8x128xf32>
    %3 = arith.mulf %1, %2 : vector<8x128xf32>
    %c0_3 = arith.constant 0 : index
    %c0_4 = arith.constant 0 : index
    %4 = vector.load %arg2[%c0_3, %c0_4] : memref<8x128xf32, #tpu.memory_space<vmem>>, vector<8x128xf32>
    tpu.vector_store %arg2[%c0_3, %c0_4], %3 {strides = array<i32>} : memref<8x128xf32, #tpu.memory_space<vmem>>, vector<8x128xf32>,
    return
  }
  func.func @transform_0(%arg0: i32) -> (i32, i32, i32) {
    %c0_i32 = arith.constant 0 : i32
    %c0_i32_0 = arith.constant 0 : i32
    %c0_i32_1 = arith.constant 0 : i32
    return %arg0, %c0_i32, %c0_i32_0 : i32, i32, i32
  }
  func.func @transform_1(%arg0: i32) -> (i32, i32) {
    %c0_i32 = arith.constant 0 : i32
    %c0_i32_0 = arith.constant 0 : i32
    return %arg0, %c0_i32 : i32, i32
  }
}

</mosaic_0001>

<bundles_post_ra>
// kernel: tpu_custom_call.1
= control target key start
LH: loop header
LB: loop body
LE: loop exit
PB: predicated region body
PF: predicated region fallthrough
CT: control target
= control target key end

     0   :  { %6 = vsyncpa [#allocation3], 0  ;;  %s234_s0 = inlined_call_operand.hbm [shape: f32[8,16,128], index: 0, kind: input, shape index: {}]   ;;  %s235_s1 = inlined_call_operand.hbm [shape: f32[8,128], index: 1, kind: output, shape index: {}]  }
   0x1   :  { %7 = vsyncpa [#allocation4], 0  ;;  %s194_s6 = smov [#allocation2]   ;;  %s146_s10 = scalar_lea.hbm %s234_s0, 2048 }
   0x2   :  { %s13_s7 = sshll.u32 %s194_s6, 4  ;;  %p147_p0 = scmp.ne.s32.totalorder %s234_s0, %s146_s10  ;;  %s14_s7 = int_to_ptr.vmem [resolvable:$true] %s13_s7 }
   0x3   :  { %p150_p1 = scmp.lt.u32.totalorder %s146_s10, %s234_s0 }
   0x5   :  { %p152_p2 = pnand %p150_p1, %p147_p0 }
   0x7   :  { %155 = shalt.err (!%p152_p2)
}
   0x8   :  { %s156_s15 = scalar_lea.vmem %s14_s7, 2048  ;;  %p161_p4 = scmp.lt.s32.totalorder %s14_s7, %s14_s7 }
   0x9   :  { %p157_p3 = scmp.ne.s32.totalorder %s14_s7, %s156_s15  ;;  %p162_p5 = scmp.lt.s32.totalorder %s156_s15, %s156_s15 }
   0xb   :  { %p163_p6 = por %p162_p5, %p161_p4 }
   0xd   :  { %p164_p7 = pnand %p163_p6, %p157_p3 }
   0xf   :  { %167 = shalt.err (!%p164_p7)
}
  0x10   :  { %s195_s16 = smov 128   ;;  %s196_s17 = smov 8  }
  0x11   :  { %19 = dma.hbm_to_vmem [thread:$0]  %s234_s0, 2048, %s14_s7, [#allocation3], %s195_s16, %s195_s16, %s196_s17  }
  0x12   :  { %190 = dma.done.wait [#allocation3], 2048  }
  0x13   :  { %191 = vsyncadd [#allocation3], 4294965248  ;;  %v23_v0 = vld [vmem:[#allocation2] sm:$0xff]  ;;  %v24_v1 = vld [vmem:[#allocation2 + $0x8] sm:$0xff]  ;;  %vm111_vm0 = vcmask 1041409   ;;  %vm113_vm1 = vcmask 1042434  }
  0x14   :  { %v25_v2 = vld [vmem:[#allocation2 + $0x10] sm:$0xff]  ;;  %v26_v3 = vld [vmem:[#allocation2 + $0x18] sm:$0xff]  ;;  %v27_v4 = vld [vmem:[#allocation2 + $0x20] sm:$0xff]  ;;  %v39_v6 = vadd.f32 %v24_v1, %v23_v0  ;;  %vm115_vm2 = vcmask 1043459   ;;  %vm117_vm3 = vcmask 1044484   ;;  %vm119_vm4 = vcmask 1045509  }
  0x15   :  { %v28_v5 = vld [vmem:[#allocation2 + $0x28] sm:$0xff]  ;;  %v29_v7 = vld [vmem:[#allocation2 + $0x30] sm:$0xff]  ;;  %v30_v8 = vld [vmem:[#allocation2 + $0x38] sm:$0xff]  ;;  %v46_v10 = vadd.f32 %v26_v3, %v25_v2  ;;  %vm121_vm5 = vcmask 1046534   ;;  %s197_s0 = smov [#allocation5]   ;;  %vm123_vm6 = vcmask 1047559  }
  0x16   :  { %v31_v9 = vld [vmem:[#allocation2 + $0x40] sm:$0xff]  ;;  %v53_v11 = vadd.f32 %v28_v5, %v27_v4  ;;  %v32_v12 = vld [vmem:[#allocation2 + $0x48] sm:$0xff]  ;;  %v33_v13 = vld [vmem:[#allocation2 + $0x50] sm:$0xff]  ;;  %v40_v15 = vrot.slane %v39_v6, 4  ;;  %v60_v16 = vadd.f32 %v30_v8, %v29_v7  ;;  %s133_s20 = sshll.u32 %s197_s0, 4  ;;  %s134_s20 = int_to_ptr.vmem [resolvable:$true] %s133_s20 }
  0x17   :  { %v34_v14 = vld [vmem:[#allocation2 + $0x58] sm:$0xff]  ;;  %v35_v17 = vld [vmem:[#allocation2 + $0x60] sm:$0xff]  ;;  %v36_v18 = vld [vmem:[#allocation2 + $0x68] sm:$0xff]  ;;  %v47_v20 = vrot.slane %v46_v10, 4  ;;  %v67_v22 = vadd.f32 %v32_v12, %v31_v9  ;;  %s168_s21 = scalar_lea.vmem %s134_s20, 128  ;;  %p173_p9 = scmp.lt.s32.totalorder %s134_s20, %s134_s20 }
  0x18   :  { %v37_v19 = vld [vmem:[#allocation2 + $0x70] sm:$0xff]  ;;  %v54_v21 = vrot.slane %v53_v11, 4  ;;  %v74_v23 = vadd.f32 %v34_v14, %v33_v13  ;;  %v38_v24 = vld [vmem:[#allocation2 + $0x78] sm:$0xff]  ;;  %v41_v25 = vadd.f32 %v40_v15, %v39_v6  ;;  %v61_v26 = vrot.slane %v60_v16, 4  ;;  %p169_p8 = scmp.ne.s32.totalorder %s134_s20, %s168_s21  ;;  %p174_p10 = scmp.lt.s32.totalorder %s168_s21, %s168_s21 }
  0x19   :  { %v81_v27 = vadd.f32 %v36_v18, %v35_v17  ;;  %v48_v28 = vadd.f32 %v47_v20, %v46_v10  ;;  %v68_v30 = vrot.slane %v67_v22, 4  ;;  %v88_v35 = vadd.f32 %v38_v24, %v37_v19 }
  0x1a   :  { %v55_v29 = vadd.f32 %v54_v21, %v53_v11  ;;  %v75_v31 = vrot.slane %v74_v23, 4  ;;  %v42_v32 = vrot.slane %v41_v25, 2  ;;  %v62_v33 = vadd.f32 %v61_v26, %v60_v16  ;;  %p175_p11 = por %p174_p10, %p173_p9 }
  0x1b   :  { %v82_v34 = vrot.slane %v81_v27, 4  ;;  %v49_v36 = vrot.slane %v48_v28, 2  ;;  %v69_v38 = vadd.f32 %v68_v30, %v67_v22  ;;  %v89_v43 = vrot.slane %v88_v35, 4 }
  0x1c   :  { %v56_v37 = vrot.slane %v55_v29, 2  ;;  %v76_v39 = vadd.f32 %v75_v31, %v74_v23  ;;  %v43_v40 = vadd.f32 %v42_v32, %v41_v25  ;;  %v63_v41 = vrot.slane %v62_v33, 2  ;;  %p176_p12 = pnand %p175_p11, %p169_p8 }
  0x1d   :  { %v83_v42 = vadd.f32 %v82_v34, %v81_v27  ;;  %v50_v44 = vadd.f32 %v49_v36, %v48_v28  ;;  %v70_v46 = vrot.slane %v69_v38, 2  ;;  %v90_v51 = vadd.f32 %v89_v43, %v88_v35 }
  0x1e   :  { %v57_v45 = vadd.f32 %v56_v37, %v55_v29  ;;  %v77_v47 = vrot.slane %v76_v39, 2  ;;  %v44_v48 = vrot.slane %v43_v40, 1  ;;  %v64_v49 = vadd.f32 %v63_v41, %v62_v33 }
  0x1f   :  { %v84_v50 = vrot.slane %v83_v42, 2  ;;  %v51_v52 = vrot.slane %v50_v44, 1  ;;  %v71_v54 = vadd.f32 %v70_v46, %v69_v38  ;;  %v91_v59 = vrot.slane %v90_v51, 2 }
  0x20   :  { %v58_v53 = vrot.slane %v57_v45, 1  ;;  %v78_v55 = vadd.f32 %v77_v47, %v76_v39  ;;  %v45_v56 = vadd.f32 %v44_v48, %v43_v40  ;;  %v65_v57 = vrot.slane %v64_v49, 1 }
  0x21   :  { %v85_v58 = vadd.f32 %v84_v50, %v83_v42  ;;  %v52_v60 = vadd.f32 %v51_v52, %v50_v44  ;;  %v72_v62 = vrot.slane %v71_v54, 1  ;;  %v92_v2 = vadd.f32 %v91_v59, %v90_v51 }
  0x22   :  { %v59_v61 = vadd.f32 %v58_v53, %v57_v45  ;;  %v79_v63 = vrot.slane %v78_v55, 1  ;;  %v66_v0 = vadd.f32 %v65_v57, %v64_v49  ;;  %v95_v3 = vmul.f32 0.0625, %v45_v56 }
  0x23   :  { %v86_v1 = vrot.slane %v85_v58, 1  ;;  %v73_v4 = vadd.f32 %v72_v62, %v71_v54  ;;  %v96_v6 = vmul.f32 0.0625, %v52_v60  ;;  %v93_v9 = vrot.slane %v92_v2, 1 }
  0x24   :  { %v80_v5 = vadd.f32 %v79_v63, %v78_v55  ;;  %v97_v7 = vmul.f32 0.0625, %v59_v61  ;;  %v98_v10 = vmul.f32 0.0625, %v66_v0 }
  0x25   :  { %v87_v8 = vadd.f32 %v86_v1, %v85_v58  ;;  %v99_v11 = vmul.f32 0.0625, %v73_v4  ;;  %v112_v13 = vsel %vm111_vm0, %v96_v6, %v95_v3  ;;  %v94_v14 = vadd.f32 %v93_v9, %v92_v2 }
  0x26   :  { %v100_v12 = vmul.f32 0.0625, %v80_v5  ;;  %v114_v16 = vsel %vm113_vm1, %v97_v7, %v112_v13 }
  0x27   :  { %v101_v15 = vmul.f32 0.0625, %v87_v8  ;;  %v116_v17 = vsel %vm115_vm2, %v98_v10, %v114_v16  ;;  %v102_v18 = vmul.f32 0.0625, %v94_v14 }
  0x28   :  { %v118_v19 = vsel %vm117_vm3, %v99_v11, %v116_v17 }
  0x29   :  { %v120_v20 = vsel %vm119_vm4, %v100_v12, %v118_v19 }
  0x2a   :  { %v122_v21 = vsel %vm121_vm5, %v101_v15, %v120_v20 }
  0x2b   :  { %v124_v22 = vsel %vm123_vm6, %v102_v18, %v122_v21 }
  0x2c   :  { %126 = vst [vmem:[#allocation5] sm:$0xff] %v124_v22 }
  0x2d   :  { %179 = shalt.err (!%p176_p12)
}
  0x2e   :  { %s180_s24 = scalar_lea.hbm %s235_s1, 128 }
  0x2f   :  { %p181_p13 = scmp.ne.s32.totalorder %s235_s1, %s180_s24  ;;  %p184_p0 = scmp.lt.u32.totalorder %s180_s24, %s235_s1 }
  0x31   :  { %p186_p1 = pnand %p184_p0, %p181_p13 }
  0x33   :  { %189 = shalt.err (!%p186_p1)
}
  0x34   :  { %136 = dma.vmem_to_hbm [thread:$0]  %s134_s20, 128, %s235_s1, [#allocation4]  }
  0x35   :  { %192 = dma.done.wait [#allocation4], 128  }
  0x36   :  { %193 = vsyncadd [#allocation4], 4294967168 }
  0x37   :  { %140 = vsyncpa [#allocation3], 1 }
  0x38   :  { %141 = vsyncpa [#allocation4], 1 }

</bundles_post_ra>
